<compile_context>
chip_gen: v7x
topology: tpu7x:2x2x1
jax: 0.10.0
libtpu: 0.0.40
codegen_flags: <defaults>
</compile_context>

<pallas_src>
import functools

import jax
import jax.numpy as jnp
from jax.experimental import pallas as pl
from jax.experimental.pallas import tpu as pltpu


def _patch_embed_kernel(x_ref, w_ref, b_ref, o_ref):
    """One tile of patch rows.

    x_ref: (TM, K)      flattened patches, bfloat16
    w_ref: (K, E_pad)   projection weight (conv weight reshaped/transposed), bfloat16
    b_ref: (1, E_pad)   projection bias, float32 (zero-padded)
    o_ref: (TM, E_pad)  quant-dequantized embeddings
    """
    # Projection (MXU matmul, f32 accumulation) + bias.
    y = jnp.dot(x_ref[...], w_ref[...], preferred_element_type=jnp.float32)
    y = y + b_ref[...]

    # Per-row symmetric dynamic int4 quantize -> dequantize (all f32).
    # Zero-padded columns contribute |0| and never change the row amax.
    amax = jnp.max(jnp.abs(y), axis=-1, keepdims=True)          # (TM, 1)
    scale = amax / 7.0
    safe_scale = jnp.where(scale > 0.0, scale, 1.0)
    inv_scale = pl.reciprocal(safe_scale, approx=False)
    q = jnp.clip(jnp.round(y * inv_scale), -8.0, 7.0)
    dq = q * scale                                               # scale==0 -> 0
    o_ref[...] = dq.astype(o_ref.dtype)


def _nchw_to_patch_matrix(x, patch_size):
    """(B, C, H, W) -> (B*num_patches, C*P*P), patch flattened in (c, kh, kw) order."""
    B, C, H, W = x.shape
    P = patch_size
    Hp, Wp = H // P, W // P
    x = x.reshape(B, C, Hp, P, Wp, P)
    # -> (B, Hp, Wp, C, P, P): patch-major rows, (c, kh, kw) flattening matches
    # how PyTorch flattens Conv2d weight (out, in, kh, kw).
    x = x.transpose(0, 2, 4, 1, 3, 5)
    return x.reshape(B * Hp * Wp, C * P * P)


def _round_up(v, m):
    return ((v + m - 1) // m) * m


def _choose_tm(m_rows, k, e_pad, *, target=512, vmem_budget=24 << 20):
    """Largest row tile (multiple of 16, <= target) whose double-buffered working
    set fits a conservative VMEM budget (safe for v7x's smaller VMEM)."""
    resident = 2 * (k * e_pad * 2) + 2 * (e_pad * 4)   # bf16 weight + f32 bias, 2 buffers
    per_row = 2 * (k * 2) + 2 * (e_pad * 4)            # bf16 input row + f32 output row, 2 buffers
    tm = max(16, min(target, (vmem_budget - resident) // per_row))
    tm = (tm // 16) * 16
    return min(tm, _round_up(m_rows, 16))


@functools.partial(jax.jit, static_argnames=("patch_size",))
def edgeformer_patch_embedding(x_nchw, conv_weight, conv_bias, *, patch_size):
    """Forward pass of EdgeFormerPatchEmbedding (compress=True).

    x_nchw:      (B, C, H, W) float32   -- NCHW, same as the PyTorch module.
    conv_weight: (E, C, P, P) float32   -- nn.Conv2d weight layout.
    conv_bias:   (E,)         float32
    returns:     (B, num_patches, E) float32
    """
    B, C, H, W = x_nchw.shape
    P = patch_size
    E = conv_weight.shape[0]
    Hp, Wp = H // P, W // P
    num_patches = Hp * Wp
    M = B * num_patches
    K = C * P * P

    # Lane-dense output: pad embed_dim to a multiple of 128.
    E_pad = _round_up(E, 128)

    # Cast to bf16 BEFORE the rearrange to halve the HBM traffic of that pass.
    patches = _nchw_to_patch_matrix(x_nchw.astype(jnp.bfloat16), P)      # (M, K) bf16
    w = conv_weight.reshape(E, K).T.astype(jnp.bfloat16)                 # (K, E) bf16
    w = jnp.pad(w, ((0, 0), (0, E_pad - E)))                             # (K, E_pad)
    b = jnp.pad(conv_bias, (0, E_pad - E)).reshape(1, E_pad)             # (1, E_pad) f32

    # Row tiling: fixed large tile, VMEM-capped; ragged tail handled by padding.
    TM = _choose_tm(M, K, E_pad)
    M_pad = _round_up(M, TM)
    if M_pad != M:
        patches = jnp.pad(patches, ((0, M_pad - M), (0, 0)))
    grid = (M_pad // TM,)

    out_flat = pl.pallas_call(
        _patch_embed_kernel,
        out_shape=jax.ShapeDtypeStruct((M_pad, E_pad), x_nchw.dtype),
        grid_spec=pltpu.PrefetchScalarGridSpec(
            num_scalar_prefetch=0,
            grid=grid,
            in_specs=[
                pl.BlockSpec((TM, K), lambda i: (i, 0)),       # patches tile (bf16)
                pl.BlockSpec((K, E_pad), lambda i: (0, 0)),    # full weight, resident
                pl.BlockSpec((1, E_pad), lambda i: (0, 0)),    # bias
            ],
            out_specs=pl.BlockSpec((TM, E_pad), lambda i: (i, 0)),
        ),
        compiler_params=pltpu.CompilerParams(
            dimension_semantics=("parallel",),
        ),
    )(patches, w, b)

    # Drop the padded rows/columns (padded rows are garbage but strictly per-row,
    # so they cannot contaminate valid rows).
    return out_flat[:M, :E].reshape(B, num_patches, E)


def _reference(x_nchw, conv_weight, conv_bias, patch_size):
    """Pure-JAX reference with matching bf16 matmul operands."""
    B, C, H, W = x_nchw.shape
    P = patch_size
    E = conv_weight.shape[0]
    patches = _nchw_to_patch_matrix(x_nchw.astype(jnp.bfloat16), P)      # (M, K)
    w = conv_weight.reshape(E, -1).T.astype(jnp.bfloat16)                # (K, E)
    y = jnp.dot(patches, w, preferred_element_type=jnp.float32) + conv_bias[None, :]
    amax = jnp.max(jnp.abs(y), axis=-1, keepdims=True)
    scale = amax / 7.0
    safe = jnp.where(scale > 0.0, scale, 1.0)
    dq = jnp.clip(jnp.round(y * (1.0 / safe)), -8.0, 7.0) * scale
    return dq.reshape(B, (H // P) * (W // P), E).astype(x_nchw.dtype)


if __name__ == "__main__":
    # Small, deterministic example consistent with the module:
    # image_size=16, patch_size=4, in_channels=3, embed_dim=32 -> num_patches=16.
    key = jax.random.PRNGKey(0)
    k_x, k_w, k_b = jax.random.split(key, 3)

    B, C, H, W = 2, 3, 16, 16
    P = 4
    E = 32

    x = jax.random.normal(k_x, (B, C, H, W), dtype=jnp.float32)
    conv_weight = jax.random.normal(k_w, (E, C, P, P), dtype=jnp.float32) * 0.02
    conv_bias = jax.random.normal(k_b, (E,), dtype=jnp.float32) * 0.01

    out = edgeformer_patch_embedding(x, conv_weight, conv_bias, patch_size=P)
    out = jax.block_until_ready(out)

    ref = _reference(x, conv_weight, conv_bias, P)
    assert out.shape == (B, (H // P) * (W // P), E), out.shape
    assert jnp.allclose(out, ref, atol=5e-3, rtol=5e-3), float(jnp.max(jnp.abs(out - ref)))

    print("KERNEL_OK")
</pallas_src>

<mosaic_0001>
module attributes {stable_mosaic.version = 11 : i64} {
  func.func @_patch_embed_kernel(%arg0: i32, %arg1: memref<32x48xbf16, #tpu.memory_space<vmem>>, %arg2: memref<48x128xbf16, #tpu.memory_space<vmem>>, %arg3: memref<1x128xf32, #tpu.memory_space<vmem>>, %arg4: memref<32x128xf32, #tpu.memory_space<vmem>>) attributes {dimension_semantics = [#tpu.dimension_semantics<parallel>], iteration_bounds = array<i64: 1>, scalar_prefetch = 0 : i64, scratch_operands = 0 : i64, tpu.core_type = #tpu.core_type<tc>, window_params = [{transform_indices = @transform_0, window_bounds = array<i64: 32, 48>}, {pipeline_mode = #tpu.pipeline_mode<synchronous>, transform_indices = @transform_1, window_bounds = array<i64: 48, 128>}, {pipeline_mode = #tpu.pipeline_mode<synchronous>, transform_indices = @transform_2, window_bounds = array<i64: 1, 128>}, {transform_indices = @transform_3, window_bounds = array<i64: 32, 128>}]} {
    %c0 = arith.constant 0 : index
    %c0_0 = arith.constant 0 : index
    %0 = vector.load %arg1[%c0, %c0_0] : memref<32x48xbf16, #tpu.memory_space<vmem>>, vector<32x48xbf16>
    %c0_1 = arith.constant 0 : index
    %c0_2 = arith.constant 0 : index
    %1 = vector.load %arg2[%c0_1, %c0_2] : memref<48x128xbf16, #tpu.memory_space<vmem>>, vector<48x128xbf16>
    %cst = arith.constant dense<0.000000e+00> : vector<32x128xf32>
    %2 = tpu.matmul %0, %1, %cst {dimension_numbers = #tpu.dot_dimension_numbers<[1], [0], [0], [1], [0, 0, 1, 1], [], []>} : vector<32x48xbf16>, vector<48x128xbf16>, vector<32x128xf32> -> vector<32x128xf32>
    %c0_3 = arith.constant 0 : index
    %c0_4 = arith.constant 0 : index
    %3 = vector.load %arg3[%c0_3, %c0_4] : memref<1x128xf32, #tpu.memory_space<vmem>>, vector<1x128xf32>
    %4 = vector.broadcast %3 : vector<1x128xf32> to vector<32x128xf32>
    %5 = arith.addf %2, %4 : vector<32x128xf32>
    %6 = math.absf %5 : vector<32x128xf32>
    %cst_5 = arith.constant dense<0xFF800000> : vector<32xf32>
    %7 = vector.multi_reduction <maximumf>, %6, %cst_5 [1] : vector<32x128xf32> to vector<32xf32>
    %8 = vector.shape_cast %7 : vector<32xf32> to vector<32x1xf32>
    %cst_6 = arith.constant 7.000000e+00 : f32
    %9 = vector.broadcast %cst_6 : f32 to vector<32x1xf32>
    %10 = arith.divf %8, %9 : vector<32x1xf32>
    %cst_7 = arith.constant 0.000000e+00 : f32
    %11 = vector.broadcast %cst_7 : f32 to vector<32x1xf32>
    %12 = arith.cmpf ogt, %10, %11 : vector<32x1xf32>
    %cst_8 = arith.constant 1.000000e+00 : f32
    %13 = vector.broadcast %cst_8 : f32 to vector<32x1xf32>
    %14 = arith.select %12, %10, %13 : vector<32x1xi1>, vector<32x1xf32>
    %15 = tpu.reciprocal %14 : vector<32x1xf32> -> vector<32x1xf32>
    %16 = vector.broadcast %15 : vector<32x1xf32> to vector<32x128xf32>
    %17 = arith.mulf %5, %16 : vector<32x128xf32>
    %18 = math.roundeven %17 : vector<32x128xf32>
    %cst_9 = arith.constant -8.000000e+00 : f32
    %cst_10 = arith.constant 7.000000e+00 : f32
    %19 = vector.broadcast %cst_9 : f32 to vector<32x128xf32>
    %20 = arith.maximumf %19, %18 : vector<32x128xf32>
    %21 = vector.broadcast %cst_10 : f32 to vector<32x128xf32>
    %22 = arith.minimumf %21, %20 : vector<32x128xf32>
    %23 = vector.broadcast %10 : vector<32x1xf32> to vector<32x128xf32>
    %24 = arith.mulf %22, %23 : vector<32x128xf32>
    %c0_11 = arith.constant 0 : index
    %c0_12 = arith.constant 0 : index
    %25 = vector.load %arg4[%c0_11, %c0_12] : memref<32x128xf32, #tpu.memory_space<vmem>>, vector<32x128xf32>
    tpu.vector_store %arg4[%c0_11, %c0_12], %24 {strides = array<i32>} : memref<32x128xf32, #tpu.memory_space<vmem>>, vector<32x128xf32>,
    return
  }
  func.func @transform_0(%arg0: i32) -> (i32, i32) {
    %c0_i32 = arith.constant 0 : i32
    %c0_i32_0 = arith.constant 0 : i32
    return %arg0, %c0_i32 : i32, i32
  }
  func.func @transform_1(%arg0: i32) -> (i32, i32) {
    %c0_i32 = arith.constant 0 : i32
    %c0_i32_0 = arith.constant 0 : i32
    %c0_i32_1 = arith.constant 0 : i32
    return %c0_i32, %c0_i32_0 : i32, i32
  }
  func.func @transform_2(%arg0: i32) -> (i32, i32) {
    %c0_i32 = arith.constant 0 : i32
    %c0_i32_0 = arith.constant 0 : i32
    %c0_i32_1 = arith.constant 0 : i32
    return %c0_i32, %c0_i32_0 : i32, i32
  }
  func.func @transform_3(%arg0: i32) -> (i32, i32) {
    %c0_i32 = arith.constant 0 : i32
    %c0_i32_0 = arith.constant 0 : i32
    return %arg0, %c0_i32 : i32, i32
  }
}

</mosaic_0001>

<bundles_post_ra>
// kernel: edgeformer_patch_embedding.1
= control target key start
LH: loop header
LB: loop body
LE: loop exit
PB: predicated region body
PF: predicated region fallthrough
CT: control target
= control target key end

     0   :  { %vm61_vm0 = vcmask 392192   ;;  %s306_s0 = inlined_call_operand.vmem [shape: bf16[32,48], index: 0, kind: input, shape index: {}]   ;;  %s307_s1 = inlined_call_operand.vmem [shape: bf16[48,128], index: 1, kind: input, shape index: {}]   ;;  %s308_s2 = inlined_call_operand.vmem [shape: f32[1,128], index: 2, kind: input, shape index: {}]   ;;  %s309_s3 = inlined_call_operand.hbm [shape: f32[32,128], index: 3, kind: output, shape index: {}]  }
   0x1   :  { %v216_v0 = vld [vmem:[%s307_s1] sm:$0xff]   ;;  %v217_v1 = vld [vmem:[%s307_s1 + $0x8] sm:$0xff]   ;;  %v218_v3 = vld [vmem:[%s307_s1 + $0x10] sm:$0xff]  }
   0x2   :  { %199 = vmatprep.subr.bf16.mxu0 %v216_v0  ;;  %v219_v2 = vld [vmem:[%s306_s0] sm:$0xff]  }
   0x3   :  { %200 = vmatpush3.bf16.msra.mxu0 %v216_v0  ;;  %205 = vmatprep.mubr.msk.bf16.mxu0 %vm61_vm0, %v219_v2 }
   0x4   :  { %201 = vmatprep.subr.bf16.mxu0 %v217_v1 }
   0x5   :  { %8 = vsyncpa [#allocation3], 0  ;;  %v220_v4 = vld [vmem:[%s306_s0 + $0x8] sm:$0xff]   ;;  %v186_v5 = vld [vmem:[%s308_s2] ss:$0 sm:$0xff]  ;;  %s253_s0 = smov [#allocation2]  }
   0x6   :  { %s175_s1 = sshll.u32 %s253_s0, 4  ;;  %s176_s1 = int_to_ptr.vmem [resolvable:$true] %s175_s1 }
   0x7   :  { %202 = vmatpush3.bf16.msra.mxu0 %v217_v1  ;;  %s229_s2 = scalar_lea.vmem %s176_s1, 512  ;;  %p234_p1 = scmp.lt.s32.totalorder %s176_s1, %s176_s1 }
   0x8   :  { %203 = vmatprep.subr.bf16.mxu0 %v218_v3  ;;  %p230_p0 = scmp.ne.s32.totalorder %s176_s1, %s229_s2  ;;  %p235_p2 = scmp.lt.s32.totalorder %s229_s2, %s229_s2 }
   0xa   :  { %p236_p3 = por %p235_p2, %p234_p1 }
   0xb   :  { %204 = vmatpush3.bf16.msra.mxu0 %v218_v3 }
   0xc   :  { %p237_p4 = pnand %p236_p3, %p230_p0 }
   0xe   :  { %206 = vmatmul.mubr.msk.bf16.vlgmr.msra.gmra.mrb[0].mxu0 %vm61_vm0, %v220_v4 }
  0xe1   :  { %v207_v6 = vpop.f32.mrb[0].mxu0 }
  0xe2   :  { %v111_v7 = vadd.f32 %v207_v6, %v186_v5  ;;  %v102_v8 = vpop.f32.mrb[1].mxu0 }
  0xe3   :  { %v103_v9 = vadd.f32 %v186_v5, %v102_v8  ;;  %v208_v10 = vpop.f32.mrb[2].mxu0 }
  0xe4   :  { %v114_v11 = vadd.f32 %v208_v10, %v186_v5  ;;  %v105_v12 = vpop.f32.mrb[3].mxu0  ;;  %v119_v13 = vand.u32 2147483647, %v111_v7 }
  0xe5   :  { %v106_v14 = vadd.f32 %v186_v5, %v105_v12  ;;  %v117_v15 = vand.u32 2147483647, %v103_v9 }
  0xe6   :  { %125 = vmax.xlane.f32.xlu1 %v119_v13  ;;  %v120_v16 = vand.u32 2147483647, %v114_v11 }
  0xe7   :  { %121 = vmax.xlane.f32.xlu0 %v117_v15  ;;  %v118_v17 = vand.u32 2147483647, %v106_v14 }
  0xea   :  { %127 = vmax.xlane.f32.xlu1 %v120_v16 }
  0xeb   :  { %123 = vmax.xlane.f32.xlu0 %v118_v17 }
 0x173   :  { %v126_v18 = vpop.xlane.xlu1 %125 }
 0x174   :  { %v132_v19 = vmul.f32 0.14285715, %v126_v18  ;;  %v122_v20 = vpop.xlane.xlu0 %121 }
 0x175   :  { %v130_v21 = vmul.f32 0.14285715, %v122_v20 }
 0x176   :  { %vm136_vm1 = vcmp.gt.f32.partialorder %v132_v19, 0.0 }
 0x177   :  { %v140_v22 = vsel %vm136_vm1, %v132_v19, 1.0  ;;  %vm134_vm2 = vcmp.gt.f32.partialorder %v130_v21, 0.0  ;;  %v128_v23 = vpop.xlane.xlu1 %127 }
 0x178   :  { %221 = vrcp.f32 %v140_v22  ;;  %v138_v24 = vsel %vm134_vm2, %v130_v21, 1.0  ;;  %v133_v25 = vmul.f32 0.14285715, %v128_v23  ;;  %v124_v26 = vpop.xlane.xlu0 %123 }
 0x179   :  { %223 = vrcp.f32 %v138_v24  ;;  %v131_v27 = vmul.f32 0.14285715, %v124_v26 }
 0x17a   :  { %vm137_vm3 = vcmp.gt.f32.partialorder %v133_v25, 0.0 }
 0x17b   :  { %v141_v28 = vsel %vm137_vm3, %v133_v25, 1.0  ;;  %vm135_vm4 = vcmp.gt.f32.partialorder %v131_v27, 0.0 }
 0x17c   :  { %225 = vrcp.f32 %v141_v28  ;;  %v139_v29 = vsel %vm135_vm4, %v131_v27, 1.0 }
 0x17d   :  { %227 = vrcp.f32 %v139_v29 }
 0x182   :  { %v222_v30 = vpop.eup %221 }
 0x183   :  { %v224_v31 = vpop.eup %223  ;;  %v148_v32 = vmul.f32 %v222_v30, %v111_v7 }
 0x184   :  { %v146_v33 = vmul.f32 %v224_v31, %v103_v9 }
 0x185   :  { %v211_v34 = vround.rtne.f32 %v148_v32 }
 0x186   :  { %v226_v35 = vpop.eup %225  ;;  %v209_v36 = vround.rtne.f32 %v146_v33 }
 0x187   :  { %v228_v37 = vpop.eup %227  ;;  %v156_v38 = vmax.f32 %v211_v34, -8.0  ;;  %v149_v39 = vmul.f32 %v226_v35, %v114_v11 }
 0x188   :  { %v154_v40 = vmax.f32 %v209_v36, -8.0  ;;  %v147_v41 = vmul.f32 %v228_v37, %v106_v14 }
 0x189   :  { %v160_v42 = vmin.f32 %v156_v38, 7.0  ;;  %v212_v43 = vround.rtne.f32 %v149_v39 }
 0x18a   :  { %v158_v44 = vmin.f32 %v154_v40, 7.0  ;;  %v210_v45 = vround.rtne.f32 %v147_v41 }
 0x18b   :  { %v164_v46 = vmul.f32 %v160_v42, %v132_v19  ;;  %v157_v47 = vmax.f32 %v212_v43, -8.0 }
 0x18c   :  { %v162_v48 = vmul.f32 %v158_v44, %v130_v21  ;;  %v155_v49 = vmax.f32 %v210_v45, -8.0 }
 0x18d   :  { %168 = vst [vmem:[#allocation2 + $0x10] sm:$0xff] %v164_v46  ;;  %v161_v50 = vmin.f32 %v157_v47, 7.0 }
 0x18e   :  { %166 = vst [vmem:[#allocation2] sm:$0xff] %v162_v48  ;;  %v159_v51 = vmin.f32 %v155_v49, 7.0 }
 0x18f   :  { %v165_v52 = vmul.f32 %v161_v50, %v133_v25 }
 0x190   :  { %v163_v53 = vmul.f32 %v159_v51, %v131_v27 }
 0x191   :  { %169 = vst [vmem:[#allocation2 + $0x18] sm:$0xff] %v165_v52 }
 0x192   :  { %167 = vst [vmem:[#allocation2 + $0x8] sm:$0xff] %v163_v53 }
 0x193   :  { %240 = shalt.err (!%p237_p4)
}
 0x194   :  { %s241_s26 = scalar_lea.hbm %s309_s3, 512 }
 0x195   :  { %p242_p5 = scmp.ne.s32.totalorder %s309_s3, %s241_s26  ;;  %p245_p6 = scmp.lt.u32.totalorder %s241_s26, %s309_s3 }
 0x197   :  { %p247_p7 = pnand %p245_p6, %p242_p5 }
 0x199   :  { %250 = shalt.err (!%p247_p7)
}
 0x19a   :  { %s254_s4 = smov 128   ;;  %s255_s5 = smov 8  }
 0x19b   :  { %181 = dma.vmem_to_hbm [thread:$0]  %s176_s1, 512, %s309_s3, [#allocation3], %s254_s4, %s254_s4, %s255_s5  }
 0x19c   :  { %251 = dma.done.wait [#allocation3], 512  }
 0x19d   :  { %252 = vsyncadd [#allocation3], 4294966784 }
 0x19e   :  { %185 = vsyncpa [#allocation3], 1 }

</bundles_post_ra>
